<compile_context>
chip_gen: v6e
topology: v6e:2x2x1
jax: 0.10.0
libtpu: 0.0.40
codegen_flags: <defaults>
</compile_context>

<pallas_src>
import functools

import jax
import jax.numpy as jnp
from jax.experimental import pallas as pl
from jax.experimental.pallas import tpu as pltpu

_LANE = 128
_SUBLANE = 8


def _round_up(x, m):
    return ((x + m - 1) // m) * m


# ----------------------------------------------------------------------------
# Kernel: one (batch block, t block) grid step.  No scratch, no reduction axis.
# ----------------------------------------------------------------------------
def _dtn_kernel(e1_ref, e2_ref, w_ref, lin_ref, out_ref, *, blk_t, feat, w_dtype):
    e1 = e1_ref[...]                                   # (bb, F)  f32
    e2 = e2_ref[...]                                   # (bb, F)  f32
    diff = jnp.abs(e1 - e2)                            # (bb, F)  f32

    # Bilinear slab on the MXU, lane-dense: N = blk_t * F.
    #   M[b, c*F + i] = sum_j e2[b, j] * W[i, j, t0 + c]
    m = jnp.dot(e2.astype(w_dtype), w_ref[...],
                preferred_element_type=jnp.float32)    # (bb, blk_t*F)  f32

    lin = lin_ref[...]                                 # (4, blk_t*F)  f32
    wb1_d = lin[0:1, :]                                # block weight for e1
    wb2_d = lin[1:2, :]                                # block weight for e2
    dif_d = lin[2:3, :]                                # difference weight
    bias_d = lin[3:4, :]                               # bias (nonzero only at i == 0)

    # Build the lane-tiled activations in-kernel (no HBM materialisation);
    # pure VPU/copy work that hides under the weight DMA.
    def tile_lanes(x):
        return x if blk_t == 1 else jnp.concatenate([x] * blk_t, axis=1)

    e1_t = tile_lanes(e1)                              # (bb, blk_t*F)
    e2_t = tile_lanes(e2)
    d_t = tile_lanes(diff)

    p = e1_t * (m + wb1_d) + e2_t * wb2_d + d_t * dif_d + bias_d   # f32

    # Reduce each F-wide lane chunk (the i index) -> one score per local t.
    cols = [jnp.sum(p[:, c * feat:(c + 1) * feat], axis=-1, keepdims=True)
            for c in range(blk_t)]
    s = cols[0] if blk_t == 1 else jnp.concatenate(cols, axis=1)   # (bb, blk_t)

    out_ref[...] = jnp.maximum(s, 0.0).astype(out_ref.dtype)


# ----------------------------------------------------------------------------
# Tile selection with full VMEM accounting (double buffers + in-kernel temps).
# ----------------------------------------------------------------------------
def _choose_t_tile(F, T, bb, w_itemsize, t_tile=None,
                   vmem_budget_bytes=20 * 1024 * 1024):
    def lane_ok(tt):
        return (tt * F) % _LANE == 0 or tt == T

    def vmem_est(tt):
        n = tt * F
        return (2 * F * n * w_itemsize          # double-buffered bilinear weight
                + 2 * 4 * n * 4                 # double-buffered linear planes (f32)
                + 2 * 2 * bb * F * 4            # e1/e2, double-buffered
                + 2 * bb * max(tt, _LANE) * 4   # output block (lane padded)
                + 6 * bb * n * 4)               # in-kernel f32 temporaries

    if t_tile is not None:
        if t_tile <= 0 or T % t_tile != 0:
            raise ValueError(f"t_tile={t_tile} must evenly divide tensor_neurons T={T}")
        if not lane_ok(t_tile):
            raise ValueError(f"t_tile*F must be a multiple of {_LANE} (or t_tile == T)")
        return t_tile

    divs = [d for d in range(1, T + 1) if T % d == 0 and lane_ok(d)]
    fitting = [d for d in divs if vmem_est(d) <= vmem_budget_bytes]
    if fitting:
        multi = [d for d in fitting if T // d >= 2]
        if multi:  # prefer ~4 grid steps (pipelining + v7x megacore), tie-break big tile
            return max(multi, key=lambda d: (-abs((T // d) - 4), d))
        return max(fitting)
    if divs:
        return min(divs)
    return T  # F not lane-friendly: fall back to the full-T block (always legal)


def _choose_b_tile(B, b_tile=None):
    if b_tile is not None:
        if b_tile <= 0 or b_tile % _SUBLANE != 0:
            raise ValueError(f"b_tile={b_tile} must be a positive multiple of {_SUBLANE}")
        bb = b_tile
    else:
        bb = min(max(_SUBLANE, _round_up(B, _SUBLANE)), 128)
    Bp = _round_up(max(B, 1), bb)
    return bb, Bp


# ----------------------------------------------------------------------------
# One-time parameter rearrangement into kernel layouts.
# ----------------------------------------------------------------------------
def prepare_params(params, compute_dtype=jnp.bfloat16):
    W = params["weight_matrix"]                        # (F, F, T)
    Wb = params["weight_matrix_block"]                 # (T, 2F)
    bias = params["bias"]                              # (T, 1)
    D = params["difference_matrix"]                    # (T, F)
    F = W.shape[0]
    T = W.shape[-1]

    # Lane-dense bilinear weight:  w_bil[j, t*F + i] = W[i, j, t]
    w_bil = jnp.transpose(W, (1, 2, 0)).reshape(F, T * F).astype(compute_dtype)

    # Dense per-(t, i) linear planes (kept f32; tiny and exact).
    wb1 = Wb[:, :F].reshape(1, T * F)                           # [t*F+i] = Wb[t, i]
    wb2 = Wb[:, F:].reshape(1, T * F)                           # [t*F+i] = Wb[t, F+i]
    dd = D.reshape(1, T * F)                                    # [t*F+i] = D[t, i]
    bias_plane = (jnp.zeros((T, F), jnp.float32)
                  .at[:, 0].set(bias[:, 0])).reshape(1, T * F)  # exact bias, once per t
    lin = jnp.concatenate([wb1, wb2, dd, bias_plane], axis=0).astype(jnp.float32)

    return {"w_bilinear": w_bil, "lin_planes": lin}


# ----------------------------------------------------------------------------
# Forward wrapper.
# ----------------------------------------------------------------------------
@functools.partial(jax.jit, static_argnames=("t_tile", "b_tile"))
def diff_tensor_network_forward(embedding_1, embedding_2, prepared,
                                *, t_tile=None, b_tile=None):
    """embedding_1/2: (B, F, 1).  Returns relu similarity scores of shape (B, T, 1)."""
    B, F, _ = embedding_1.shape
    w_bil = prepared["w_bilinear"]                     # (F, T*F)
    lin = prepared["lin_planes"]                       # (4, T*F) f32
    if w_bil.shape[0] != F:
        raise ValueError("embedding feature dim does not match prepared weights")
    T = w_bil.shape[1] // F
    compute_dtype = w_bil.dtype
    out_dtype = embedding_1.dtype

    bb, Bp = _choose_b_tile(B, b_tile)
    tt = _choose_t_tile(F, T, bb, jnp.dtype(compute_dtype).itemsize, t_tile)
    nb_b, nb_t = Bp // bb, T // tt

    # Activation plumbing: (B, F, 1) -> (Bp, F), batch padded to a sublane multiple.
    e1 = embedding_1[..., 0].astype(jnp.float32)
    e2 = embedding_2[..., 0].astype(jnp.float32)
    if Bp != B:
        e1 = jnp.pad(e1, ((0, Bp - B), (0, 0)))
        e2 = jnp.pad(e2, ((0, Bp - B), (0, 0)))

    kernel = functools.partial(_dtn_kernel, blk_t=tt, feat=F, w_dtype=compute_dtype)

    out3 = pl.pallas_call(
        kernel,
        out_shape=jax.ShapeDtypeStruct((nb_t, Bp, tt), out_dtype),
        grid_spec=pltpu.PrefetchScalarGridSpec(
            num_scalar_prefetch=0,
            grid=(nb_b, nb_t),
            in_specs=[
                pl.BlockSpec((bb, F), lambda b, t: (b, 0)),          # e1
                pl.BlockSpec((bb, F), lambda b, t: (b, 0)),          # e2
                pl.BlockSpec((F, tt * F), lambda b, t: (0, t)),      # bilinear weight
                pl.BlockSpec((4, tt * F), lambda b, t: (0, t)),      # linear planes + bias
            ],
            out_specs=pl.BlockSpec((None, bb, tt), lambda b, t: (t, b, 0)),
        ),
        compiler_params=pltpu.CompilerParams(
            dimension_semantics=("parallel", "parallel"),
            vmem_limit_bytes=32 * 1024 * 1024),
    )(e1, e2, w_bil, lin)

    # (nb_t, Bp, tt) -> (Bp, T): tiny layout fix-up on a few-KiB array.
    out2d = jnp.transpose(out3, (1, 0, 2)).reshape(Bp, T)
    return out2d[:B, :, None]                                        # (B, T, 1)


# ----------------------------------------------------------------------------
# Deterministic parameter init (xavier-uniform-style bounds, mirrors PyTorch).
# ----------------------------------------------------------------------------
def init_params(key, filters_last, tensor_neurons):
    F, T = filters_last, tensor_neurons
    k1, k2, k3, k4 = jax.random.split(key, 4)

    def xavier(k, shape, fan_in, fan_out):
        a = (6.0 / (fan_in + fan_out)) ** 0.5
        return jax.random.uniform(k, shape, jnp.float32, -a, a)

    return {
        "weight_matrix": xavier(k1, (F, F, T), F, F * T),
        "weight_matrix_block": xavier(k2, (T, 2 * F), 2 * F, T),
        "bias": xavier(k3, (T, 1), 1, T),
        "difference_matrix": xavier(k4, (T, F), F, T),
    }


# ----------------------------------------------------------------------------
# Pure-JAX reference (mirrors the PyTorch forward exactly).
# ----------------------------------------------------------------------------
def reference_forward(e1, e2, params):
    B, F, _ = e1.shape
    W = params["weight_matrix"]
    Wb = params["weight_matrix_block"]
    bias = params["bias"]
    D = params["difference_matrix"]
    T = W.shape[-1]
    hp = jax.lax.Precision.HIGHEST

    scoring = jnp.matmul(jnp.transpose(e1, (0, 2, 1)), W.reshape(F, F * T),
                         precision=hp).reshape(B, F, T)
    scoring = jnp.matmul(jnp.transpose(scoring, (0, 2, 1)), e2, precision=hp)  # (B,T,1)
    combined = jnp.concatenate((e1, e2), axis=1)                               # (B,2F,1)
    block_scoring = jnp.matmul(Wb, combined, precision=hp)                     # (B,T,1)
    difference = jnp.matmul(D, jnp.abs(e1 - e2), precision=hp)                 # (B,T,1)
    return jax.nn.relu(scoring + block_scoring + bias + difference)


if __name__ == "__main__":
    B = 2
    filters_dim_last = 64          # args.filters_dim[-1]
    F = 2 * filters_dim_last       # filters_last = 128
    T = 16                         # args.tensor_neurons

    key = jax.random.PRNGKey(0)
    kp, k1, k2 = jax.random.split(key, 3)
    params = init_params(kp, F, T)
    embedding_1 = jax.random.normal(k1, (B, F, 1), jnp.float32)
    embedding_2 = jax.random.normal(k2, (B, F, 1), jnp.float32)

    ref = reference_forward(embedding_1, embedding_2, params)

    # f32 weights, auto tiling (4 parallel t-blocks).
    prepared_f32 = prepare_params(params, jnp.float32)
    out = jax.block_until_ready(
        diff_tensor_network_forward(embedding_1, embedding_2, prepared_f32))
    assert out.shape == (B, T, 1), out.shape
    assert jnp.allclose(out, ref, atol=2e-3, rtol=2e-3), float(jnp.max(jnp.abs(out - ref)))

    # f32 weights, forced single full-T block (exercises the full-block fallback path).
    out_full = jax.block_until_ready(
        diff_tensor_network_forward(embedding_1, embedding_2, prepared_f32, t_tile=T))
    assert jnp.allclose(out_full, ref, atol=2e-3, rtol=2e-3), (
        float(jnp.max(jnp.abs(out_full - ref))))

    # Default bf16 bilinear weights (HBM-bound kernel -> halve the dominant bytes),
    # f32 accumulation and f32 linear/bias planes.
    prepared_bf16 = prepare_params(params)
    out_bf16 = jax.block_until_ready(
        diff_tensor_network_forward(embedding_1, embedding_2, prepared_bf16))
    assert jnp.allclose(out_bf16.astype(jnp.float32), ref, atol=0.25, rtol=0.05), (
        float(jnp.max(jnp.abs(out_bf16.astype(jnp.float32) - ref))))

    print("KERNEL_OK")
</pallas_src>

<mosaic_0001>
module attributes {stable_mosaic.version = 11 : i64} {
  func.func @_dtn_kernel(%arg0: i32, %arg1: i32, %arg2: memref<8x128xf32, #tpu.memory_space<vmem>>, %arg3: memref<8x128xf32, #tpu.memory_space<vmem>>, %arg4: memref<128x512xf32, #tpu.memory_space<vmem>>, %arg5: memref<4x512xf32, #tpu.memory_space<vmem>>, %arg6: memref<1x8x4xf32, #tpu.memory_space<vmem>>) attributes {dimension_semantics = [#tpu.dimension_semantics<parallel>, #tpu.dimension_semantics<parallel>], iteration_bounds = array<i64: 1, 4>, scalar_prefetch = 0 : i64, scratch_operands = 0 : i64, tpu.core_type = #tpu.core_type<tc>, window_params = [{transform_indices = @transform_0, window_bounds = array<i64: 8, 128>}, {transform_indices = @transform_1, window_bounds = array<i64: 8, 128>}, {transform_indices = @transform_2, window_bounds = array<i64: 128, 512>}, {transform_indices = @transform_3, window_bounds = array<i64: 4, 512>}, {transform_indices = @transform_4, window_bounds = array<i64: 1, 8, 4>}]} {
    %c0 = arith.constant 0 : index
    %c0_0 = arith.constant 0 : index
    %0 = vector.load %arg2[%c0, %c0_0] : memref<8x128xf32, #tpu.memory_space<vmem>>, vector<8x128xf32>
    %c0_1 = arith.constant 0 : index
    %c0_2 = arith.constant 0 : index
    %1 = vector.load %arg3[%c0_1, %c0_2] : memref<8x128xf32, #tpu.memory_space<vmem>>, vector<8x128xf32>
    %2 = arith.subf %0, %1 : vector<8x128xf32>
    %3 = math.absf %2 : vector<8x128xf32>
    %c0_3 = arith.constant 0 : index
    %c0_4 = arith.constant 0 : index
    %4 = vector.load %arg4[%c0_3, %c0_4] : memref<128x512xf32, #tpu.memory_space<vmem>>, vector<128x512xf32>
    %cst = arith.constant dense<0.000000e+00> : vector<8x512xf32>
    %5 = tpu.matmul %1, %4, %cst {dimension_numbers = #tpu.dot_dimension_numbers<[1], [0], [0], [1], [0, 0, 1, 1], [], []>} : vector<8x128xf32>, vector<128x512xf32>, vector<8x512xf32> -> vector<8x512xf32>
    %c0_5 = arith.constant 0 : index
    %c0_6 = arith.constant 0 : index
    %6 = vector.load %arg5[%c0_5, %c0_6] : memref<4x512xf32, #tpu.memory_space<vmem>>, vector<4x512xf32>
    %7 = vector.extract_strided_slice %6 {offsets = [0, 0], sizes = [1, 512], strides = [1, 1]} : vector<4x512xf32> to vector<1x512xf32>
    %8 = vector.extract_strided_slice %6 {offsets = [1, 0], sizes = [1, 512], strides = [1, 1]} : vector<4x512xf32> to vector<1x512xf32>
    %9 = vector.extract_strided_slice %6 {offsets = [2, 0], sizes = [1, 512], strides = [1, 1]} : vector<4x512xf32> to vector<1x512xf32>
    %10 = vector.extract_strided_slice %6 {offsets = [3, 0], sizes = [1, 512], strides = [1, 1]} : vector<4x512xf32> to vector<1x512xf32>
    %11 = tpu.concatenate %0, %0, %0, %0 in 1 : vector<8x128xf32>, vector<8x128xf32>, vector<8x128xf32>, vector<8x128xf32> -> vector<8x512xf32>
    %12 = tpu.concatenate %1, %1, %1, %1 in 1 : vector<8x128xf32>, vector<8x128xf32>, vector<8x128xf32>, vector<8x128xf32> -> vector<8x512xf32>
    %13 = tpu.concatenate %3, %3, %3, %3 in 1 : vector<8x128xf32>, vector<8x128xf32>, vector<8x128xf32>, vector<8x128xf32> -> vector<8x512xf32>
    %14 = vector.broadcast %7 : vector<1x512xf32> to vector<8x512xf32>
    %15 = arith.addf %5, %14 : vector<8x512xf32>
    %16 = arith.mulf %11, %15 : vector<8x512xf32>
    %17 = vector.broadcast %8 : vector<1x512xf32> to vector<8x512xf32>
    %18 = arith.mulf %12, %17 : vector<8x512xf32>
    %19 = arith.addf %16, %18 : vector<8x512xf32>
    %20 = vector.broadcast %9 : vector<1x512xf32> to vector<8x512xf32>
    %21 = arith.mulf %13, %20 : vector<8x512xf32>
    %22 = arith.addf %19, %21 : vector<8x512xf32>
    %23 = vector.broadcast %10 : vector<1x512xf32> to vector<8x512xf32>
    %24 = arith.addf %22, %23 : vector<8x512xf32>
    %25 = vector.extract_strided_slice %24 {offsets = [0, 0], sizes = [8, 128], strides = [1, 1]} : vector<8x512xf32> to vector<8x128xf32>
    %cst_7 = arith.constant dense<0.000000e+00> : vector<8xf32>
    %26 = vector.multi_reduction <add>, %25, %cst_7 [1] : vector<8x128xf32> to vector<8xf32>
    %27 = vector.shape_cast %26 : vector<8xf32> to vector<8x1xf32>
    %28 = vector.extract_strided_slice %24 {offsets = [0, 128], sizes = [8, 128], strides = [1, 1]} : vector<8x512xf32> to vector<8x128xf32>
    %cst_8 = arith.constant dense<0.000000e+00> : vector<8xf32>
    %29 = vector.multi_reduction <add>, %28, %cst_8 [1] : vector<8x128xf32> to vector<8xf32>
    %30 = vector.shape_cast %29 : vector<8xf32> to vector<8x1xf32>
    %31 = vector.extract_strided_slice %24 {offsets = [0, 256], sizes = [8, 128], strides = [1, 1]} : vector<8x512xf32> to vector<8x128xf32>
    %cst_9 = arith.constant dense<0.000000e+00> : vector<8xf32>
    %32 = vector.multi_reduction <add>, %31, %cst_9 [1] : vector<8x128xf32> to vector<8xf32>
    %33 = vector.shape_cast %32 : vector<8xf32> to vector<8x1xf32>
    %34 = vector.extract_strided_slice %24 {offsets = [0, 384], sizes = [8, 128], strides = [1, 1]} : vector<8x512xf32> to vector<8x128xf32>
    %cst_10 = arith.constant dense<0.000000e+00> : vector<8xf32>
    %35 = vector.multi_reduction <add>, %34, %cst_10 [1] : vector<8x128xf32> to vector<8xf32>
    %36 = vector.shape_cast %35 : vector<8xf32> to vector<8x1xf32>
    %37 = tpu.concatenate %27, %30, %33, %36 in 1 : vector<8x1xf32>, vector<8x1xf32>, vector<8x1xf32>, vector<8x1xf32> -> vector<8x4xf32>
    %cst_11 = arith.constant 0.000000e+00 : f32
    %38 = vector.broadcast %cst_11 : f32 to vector<8x4xf32>
    %39 = arith.maximumf %37, %38 : vector<8x4xf32>
    %c0_12 = arith.constant 0 : index
    %c0_13 = arith.constant 0 : index
    %c0_14 = arith.constant 0 : index
    %40 = vector.load %arg6[%c0_12, %c0_13, %c0_14] : memref<1x8x4xf32, #tpu.memory_space<vmem>>, vector<1x8x4xf32>
    %41 = vector.shape_cast %40 : vector<1x8x4xf32> to vector<8x4xf32>
    %42 = vector.shape_cast %39 : vector<8x4xf32> to vector<1x8x4xf32>
    tpu.vector_store %arg6[%c0_12, %c0_13, %c0_14], %42 {strides = array<i32>} : memref<1x8x4xf32, #tpu.memory_space<vmem>>, vector<1x8x4xf32>,
    return
  }
  func.func @transform_0(%arg0: i32, %arg1: i32) -> (i32, i32) {
    %c0_i32 = arith.constant 0 : i32
    %c0_i32_0 = arith.constant 0 : i32
    return %arg0, %c0_i32 : i32, i32
  }
  func.func @transform_1(%arg0: i32, %arg1: i32) -> (i32, i32) {
    %c0_i32 = arith.constant 0 : i32
    %c0_i32_0 = arith.constant 0 : i32
    return %arg0, %c0_i32 : i32, i32
  }
  func.func @transform_2(%arg0: i32, %arg1: i32) -> (i32, i32) {
    %c0_i32 = arith.constant 0 : i32
    %c0_i32_0 = arith.constant 0 : i32
    return %c0_i32, %arg1 : i32, i32
  }
  func.func @transform_3(%arg0: i32, %arg1: i32) -> (i32, i32) {
    %c0_i32 = arith.constant 0 : i32
    %c0_i32_0 = arith.constant 0 : i32
    return %c0_i32, %arg1 : i32, i32
  }
  func.func @transform_4(%arg0: i32, %arg1: i32) -> (i32, i32, i32) {
    %c0_i32 = arith.constant 0 : i32
    %c0_i32_0 = arith.constant 0 : i32
    return %arg1, %arg0, %c0_i32 : i32, i32, i32
  }
}

</mosaic_0001>

<bundles_post_ra>
// kernel: diff_tensor_network_forward.1
= control target key start
LH: loop header
LB: loop body
LE: loop exit
PB: predicated region body
PF: predicated region fallthrough
CT: control target
= control target key end

     0   :  { %9 = vsyncpa [#allocation3], 0  ;;  %s1274_s0 = inlined_call_operand.vmem [shape: f32[8,128], index: 0, kind: input, shape index: {}]   ;;  %s1275_s1 = inlined_call_operand.vmem [shape: f32[8,128], index: 1, kind: input, shape index: {}]   ;;  %s1276_s2 = inlined_call_operand.hbm [shape: f32[128,2048], index: 2, kind: input, shape index: {}]   ;;  %s1277_s3 = inlined_call_operand.hbm [shape: f32[4,2048], index: 3, kind: input, shape index: {}]   ;;  %s1278_s4 = inlined_call_operand.vmem [shape: f32[4,8,4], index: 4, kind: output, shape index: {}]  }
   0x1   :  { %11 = vsyncpa [#allocation3 + $0x1], 0 }
   0x2   :  { %12 = vsyncpa [#allocation5], 0 }
   0x3   :  { %14 = vsyncpa [#allocation5 + $0x1], 0  ;;  %s1072_s15 = smov 0   ;;  %s1074_s16 = smov 0  }
   0x4   :  { %s1076_s17 = smov 0   ;;  %s1078_s18 = smov 0  }
   0x5   :  { %s1080_s19 = smov 0   ;;  %s1082_s20 = smov 0  }
   0x6 LB: > { %s845_s21 = sadd.s32 4294967295, %s1039_s20   ;;  %s29_s22 = sadd.s32 1, %s1035_s19  ;;  %s1039_s20 = sphi %s1082_s20, %s20_s20   ;;  %s1035_s19 = sphi %s1080_s19, %s1287_s19   ;;  %s1031_s18 = sphi %s1078_s18, %s1286_s18   ;;  %s1027_s17 = sphi %s1076_s17, %s1285_s17   ;;  %s1023_s16 = sphi %s1074_s16, %s1284_s16   ;;  %s1019_s15 = sphi %s1072_s15, %s1283_s15  }
   0x7   : > { %p30_p0 = scmp.ge.s32.totalorder %s29_s22, 4  ;;  %s91_s23 = sadd.s32 1, %s1027_s17 }
   0x8   : > { %p98_p1 = scmp.ne.s32.totalorder %s1027_s17, %s1023_s16  ;;  %p99_p2 = scmp.eq.s32.totalorder %s1039_s20, 0 }
   0x9   : > { %s1289_s22 = smov (%p30_p0, %s29_s22), 0  ;;  %p104_p4 = scmp.ne.s32.totalorder %s1023_s16, %s1019_s15 }
   0xa   : > { %p1108_p3 = por %p99_p2, %p98_p1  ;;  %s88_s25 = ssub.s32 %s1035_s19, %s1289_s22 }
   0xb   : > { %p105_p5 = scmp.eq.s32.totalorder %s845_s21, 0  ;;  %p89_p6 = scmp.eq.s32.totalorder %s88_s25, 0 }
   0xc   : > { %p876_p8 = scmp.lt.s32.totalorder %s1039_s20, 4  ;;  %s1124_s28 = sand.u32 1, %s1027_s17  }
   0xd   : > { %p1115_p7 = por %p105_p5, %p104_p4  ;;  %s863_s29 = sshll.u32 %s1035_s19, 9 }
   0xe   : > { %s1121_s27 = scalar_select %p89_p6, %s1027_s17, %s91_s23  }
   0xf   : > { %s851_s30 = sshll.u32 %s1124_s28, 9  ;;  %s206_s7 = scalar_lea.hbm %s1276_s2, %s863_s29 }
  0x10   : > { %s200_s8 = scalar_lea.vmem [#allocation2], %s851_s30  ;;  %p1133_p9 = pnand %p876_p8, %p1108_p3 }
  0x11   : > { %s207_s9 = sshll.u32 %s200_s8, 4  ;;  %p857_p10 = scmp.ge.s32.totalorder %s1039_s20, 1  ;;  %s208_s9 = int_to_ptr.vmem [resolvable:$true] %s207_s9 }
  0x12   : > { %s197_s11 = scalar_lea.sflag [#allocation3], %s1124_s28  ;;  %p931_p11 = pneg %p1133_p9 }
  0x13   : > { %s942_s12 = scalar_lea.vmem %s208_s9, 8192  ;;  %s1041_s13 = smov [#allocation2]  }
  0x14   : > { %p943_p12 = scmp.ne.s32.totalorder %s208_s9, %s942_s12  ;;  %s947_s14 = sshll.u32 %s1041_s13, 4  ;;  %s948_s14 = int_to_ptr.vmem [resolvable:$false] %s947_s14 }
  0x15   : > { %s949_s15 = scalar_lea.vmem %s948_s14, 16384  ;;  %p950_p1 = scmp.lt.s32.totalorder %s208_s9, %s948_s14 }
  0x16   : > { %p945_p13 = pnand %p943_p12, %p931_p11  ;;  %p951_p2 = scmp.lt.s32.totalorder %s949_s15, %s942_s12 }
  0x18   : > { %p946_p0 = pneg %p945_p13  ;;  %p952_p3 = por %p951_p2, %p950_p1 }
  0x1a   : > { %p953_p4 = pnand %p952_p3, %p946_p0 }
  0x1c   : > { %956 = shalt.err (!%p953_p4)
}
  0x1d   : > { %s1042_s21 = smov 2048   ;;  %s1043_s23 = smov 512  }
  0x1e   : > { %s1044_s24 = smov 32   ;;  %p234_p5 = scmp.lt.s32.totalorder %s1039_s20, 5 }
  0x1f   : > { %872 = dma.hbm_to_vmem [thread:$0]  (!%p1133_p9), %s206_s7, 8192, %s208_s9, %s197_s11, %s1042_s21, %s1043_s23, %s1044_s24  }
  0x20   : > { %s854_s25 = sshll.u32 %s1124_s28, 4  ;;  %s864_s29 = sshll.u32 %s1035_s19, 8 }
  0x21   : > { %p1151_p6 = pnand %p857_p10, %p234_p5  ;;  %s227_s8 = scalar_lea.hbm %s1277_s3, %s864_s29 }
  0x22   : > { %s221_s12 = scalar_lea.vmem [#allocation4], %s854_s25  ;;  %s218_s14 = scalar_lea.sflag [#allocation5], %s1124_s28 }
  0x23   : > { %s229_s13 = sshll.u32 %s221_s12, 4  ;;  %s1045_s7 = smov [#allocation4]   ;;  %s230_s13 = int_to_ptr.vmem [resolvable:$true] %s229_s13 }
  0x24   : > { %s970_s15 = scalar_lea.vmem %s230_s13, 256  ;;  %s975_s9 = sshll.u32 %s1045_s7, 4  ;;  %s976_s9 = int_to_ptr.vmem [resolvable:$false] %s975_s9 }
  0x25   : > { %p971_p8 = scmp.ne.s32.totalorder %s230_s13, %s970_s15  ;;  %s977_s11 = scalar_lea.vmem %s976_s9, 512 }
  0x26   : > { %p978_p10 = scmp.lt.s32.totalorder %s230_s13, %s976_s9  ;;  %p979_p0 = scmp.lt.s32.totalorder %s977_s11, %s970_s15 }
  0x27   : > { %p973_p12 = pnand %p971_p8, %p931_p11 }
  0x28   : > { %p980_p1 = por %p979_p0, %p978_p10 }
  0x29   : > { %p974_p13 = pneg %p973_p12 }
  0x2b   : > { %p981_p2 = pnand %p980_p1, %p974_p13 }
  0x2d   : > { %984 = shalt.err (!%p981_p2)
}
  0x2e   : > { %875 = dma.hbm_to_vmem [thread:$0]  (!%p1133_p9), %s227_s8, 256, %s230_s13, %s218_s14  }
  0x2f   : > { %238 = sbr.rel (%p1151_p6) target bundleno = 441 (0x1b9), region = 36  ;;  %s240_s28 = sand.u32 (!%p1151_p6), 1, %s1023_s16  }
  0x30   : > { %s858_s21 = sshll.u32 (!%p1151_p6), %s240_s28, 9  ;;  %s241_s23 = scalar_lea.sflag (!%p1151_p6), [#allocation3], %s240_s28 }
  0x31   : > { %s1167_s24 = scalar_lea.vmem (!%p1151_p6), [#allocation2], %s858_s21 }
  0x34   : > { %1010 = dma.done.wait (%p1115_p7), %s241_s23, 8192  }
  0x35   : > { %1012 = vsyncadd (%p1115_p7), %s241_s23, 4294959104  ;;  %s859_s25 = sshll.u32 %s240_s28, 4  ;;  %s250_s29 = scalar_lea.sflag [#allocation5], %s240_s28 }
  0x36   : > { %s1173_s10 = scalar_lea.vmem [#allocation4], %s859_s25 }
  0x37   : > { %1014 = dma.done.wait (%p1115_p7), %s250_s29, 256  }
  0x38   : > { %1016 = vsyncadd (%p1115_p7), %s250_s29, 4294967040  ;;  %v1046_v0 = vmov 0.0   ;;  %v375_v1 = vld [vmem:[%s1167_s24 + $0x1e8] sm:$0xff]  ;;  %v377_v2 = vld [vmem:[%s1167_s24 + $0x1f8] sm:$0xff]  ;;  %p303_p7 = scmp.lt.s32.totalorder %s1031_s18, 3  ;;  %vm700_vm0 = vcmask 7168  }
  0x39   : > { %482 = vmatprep.mubr.f32.mxu0 %v1046_v0  ;;  %553 = vmatprep.mubr.f32.mxu1 %v1046_v0  ;;  %v374_v3 = vld [vmem:[%s1167_s24 + $0x1e0] sm:$0xff]  ;;  %v376_v4 = vld [vmem:[%s1167_s24 + $0x1f0] sm:$0xff]  ;;  %v371_v5 = vld [vmem:[%s1167_s24 + $0x1c8] sm:$0xff]  ;;  %vm702_vm1 = vcmask 15360   ;;  %vm704_vm2 = vcmask 23552   ;;  %vm707_vm3 = vcmask 31744  }
  0x3a   : > { %418 = vmatprep.subr.mxu0 %v375_v1  ;;  %489 = vmatprep.subr.mxu1 %v377_v2  ;;  %v373_v6 = vld [vmem:[%s1167_s24 + $0x1d8] sm:$0xff]  ;;  %v370_v7 = vld [vmem:[%s1167_s24 + $0x1c0] sm:$0xff]  ;;  %v372_v8 = vld [vmem:[%s1167_s24 + $0x1d0] sm:$0xff]  ;;  %v382_v2 = vlaneseq  ;;  %s1291_s18 = smov (!%p303_p7, %s1031_s18), 3 }
  0x3b   : > { %419 = vmatpush1.msra.mxu0 %v374_v3  ;;  %490 = vmatpush1.msra.mxu1 %v376_v4  ;;  %v367_v9 = vld [vmem:[%s1167_s24 + $0x1a8] sm:$0xff]  ;;  %v369_v10 = vld [vmem:[%s1167_s24 + $0x1b8] sm:$0xff]  ;;  %v366_v11 = vld [vmem:[%s1167_s24 + $0x1a0] sm:$0xff]  ;;  %s860_s8 = sshll.u32 %s1291_s18, 3 }
  0x3c   : > { %420 = vmatprep.subr.mxu0 %v371_v5  ;;  %491 = vmatprep.subr.mxu1 %v373_v6  ;;  %v368_v12 = vld [vmem:[%s1167_s24 + $0x1b0] sm:$0xff]  ;;  %v363_v13 = vld [vmem:[%s1167_s24 + $0x188] sm:$0xff]  ;;  %v365_v14 = vld [vmem:[%s1167_s24 + $0x198] sm:$0xff]  ;;  %v383_v3 = vshrl.u32 %v382_v2, 7  ;;  %s309_s14 = scalar_lea.vmem %s1278_s4, %s860_s8 }
  0x3d   : > { %421 = vmatpush1.msra.mxu0 %v370_v7  ;;  %492 = vmatpush1.msra.mxu1 %v372_v8  ;;  %v362_v15 = vld [vmem:[%s1167_s24 + $0x180] sm:$0xff]  ;;  %v364_v16 = vld [vmem:[%s1167_s24 + $0x190] sm:$0xff]  ;;  %v359_v17 = vld [vmem:[%s1167_s24 + $0x168] sm:$0xff] }
  0x3e   : > { %422 = vmatprep.subr.mxu0 %v367_v9  ;;  %493 = vmatprep.subr.mxu1 %v369_v10  ;;  %v361_v18 = vld [vmem:[%s1167_s24 + $0x178] sm:$0xff]  ;;  %v358_v19 = vld [vmem:[%s1167_s24 + $0x160] sm:$0xff]  ;;  %v360_v20 = vld [vmem:[%s1167_s24 + $0x170] sm:$0xff]  ;;  %v566_v4 = vsub.s32 1, %v383_v3  ;;  %v384_v5 = vsub.s32 0, %v383_v3  ;;  %v570_v7 = vsub.s32 5, %v383_v3 }
  0x3f   : > { %423 = vmatpush1.msra.mxu0 %v366_v11  ;;  %494 = vmatpush1.msra.mxu1 %v368_v12  ;;  %v355_v21 = vld [vmem:[%s1167_s24 + $0x148] sm:$0xff]  ;;  %v357_v22 = vld [vmem:[%s1167_s24 + $0x158] sm:$0xff]  ;;  %v354_v23 = vld [vmem:[%s1167_s24 + $0x140] sm:$0xff]  ;;  %v610_v10 = vsub.s32 2, %v383_v3  ;;  %v388_v11 = vsub.s32 4, %v383_v3 }
  0x40   : > { %424 = vmatprep.subr.mxu0 %v363_v13  ;;  %495 = vmatprep.subr.mxu1 %v365_v14  ;;  %v356_v24 = vld [vmem:[%s1167_s24 + $0x150] sm:$0xff]  ;;  %v351_v25 = vld [vmem:[%s1167_s24 + $0x128] sm:$0xff]  ;;  %v353_v26 = vld [vmem:[%s1167_s24 + $0x138] sm:$0xff] }
  0x41   : > { %425 = vmatpush1.msra.mxu0 %v362_v15  ;;  %496 = vmatpush1.msra.mxu1 %v364_v16  ;;  %v350_v27 = vld [vmem:[%s1167_s24 + $0x120] sm:$0xff]  ;;  %v352_v28 = vld [vmem:[%s1167_s24 + $0x130] sm:$0xff]  ;;  %v347_v29 = vld [vmem:[%s1167_s24 + $0x108] sm:$0xff]  ;;  %v614_v15 = vsub.s32 6, %v383_v3 }
  0x42   : > { %426 = vmatprep.subr.mxu0 %v359_v17  ;;  %497 = vmatprep.subr.mxu1 %v361_v18  ;;  %v349_v30 = vld [vmem:[%s1167_s24 + $0x118] sm:$0xff]  ;;  %v346_v31 = vld [vmem:[%s1167_s24 + $0x100] sm:$0xff]  ;;  %v348_v32 = vld [vmem:[%s1167_s24 + $0x110] sm:$0xff] }
  0x43   : > { %427 = vmatpush1.msra.mxu0 %v358_v19  ;;  %498 = vmatpush1.msra.mxu1 %v360_v20  ;;  %v343_v33 = vld [vmem:[%s1167_s24 + $0xe8] sm:$0xff]  ;;  %v345_v34 = vld [vmem:[%s1167_s24 + $0xf8] sm:$0xff]  ;;  %v342_v35 = vld [vmem:[%s1167_s24 + $0xe0] sm:$0xff] }
  0x44   : > { %428 = vmatprep.subr.mxu0 %v355_v21  ;;  %499 = vmatprep.subr.mxu1 %v357_v22  ;;  %v344_v36 = vld [vmem:[%s1167_s24 + $0xf0] sm:$0xff]  ;;  %v339_v37 = vld [vmem:[%s1167_s24 + $0xc8] sm:$0xff]  ;;  %v341_v38 = vld [vmem:[%s1167_s24 + $0xd8] sm:$0xff]  ;;  %v654_v21 = vsub.s32 3, %v383_v3 }
  0x45   : > { %429 = vmatpush1.msra.mxu0 %v354_v23  ;;  %500 = vmatpush1.msra.mxu1 %v356_v24  ;;  %v338_v39 = vld [vmem:[%s1167_s24 + $0xc0] sm:$0xff]  ;;  %v340_v40 = vld [vmem:[%s1167_s24 + $0xd0] sm:$0xff]  ;;  %v335_v41 = vld [vmem:[%s1167_s24 + $0xa8] sm:$0xff] }
  0x46   : > { %430 = vmatprep.subr.mxu0 %v351_v25  ;;  %501 = vmatprep.subr.mxu1 %v353_v26  ;;  %v337_v42 = vld [vmem:[%s1167_s24 + $0xb8] sm:$0xff]  ;;  %v334_v43 = vld [vmem:[%s1167_s24 + $0xa0] sm:$0xff]  ;;  %v336_v44 = vld [vmem:[%s1167_s24 + $0xb0] sm:$0xff] }
  0x47   : > { %431 = vmatpush1.msra.mxu0 %v350_v27  ;;  %502 = vmatpush1.msra.mxu1 %v352_v28  ;;  %v331_v45 = vld [vmem:[%s1167_s24 + $0x88] sm:$0xff]  ;;  %v333_v46 = vld [vmem:[%s1167_s24 + $0x98] sm:$0xff]  ;;  %v330_v47 = vld [vmem:[%s1167_s24 + $0x80] sm:$0xff] }
  0x48   : > { %432 = vmatprep.subr.mxu0 %v347_v29  ;;  %503 = vmatprep.subr.mxu1 %v349_v30  ;;  %v332_v48 = vld [vmem:[%s1167_s24 + $0x90] sm:$0xff]  ;;  %v327_v49 = vld [vmem:[%s1167_s24 + $0x68] sm:$0xff]  ;;  %v329_v50 = vld [vmem:[%s1167_s24 + $0x78] sm:$0xff] }
  0x49   : > { %433 = vmatpush1.msra.mxu0 %v346_v31  ;;  %504 = vmatpush1.msra.mxu1 %v348_v32  ;;  %v326_v51 = vld [vmem:[%s1167_s24 + $0x60] sm:$0xff]  ;;  %v328_v52 = vld [vmem:[%s1167_s24 + $0x70] sm:$0xff]  ;;  %v323_v53 = vld [vmem:[%s1167_s24 + $0x48] sm:$0xff] }
  0x4a   : > { %434 = vmatprep.subr.mxu0 %v343_v33  ;;  %505 = vmatprep.subr.mxu1 %v345_v34  ;;  %v325_v54 = vld [vmem:[%s1167_s24 + $0x58] sm:$0xff]  ;;  %v322_v55 = vld [vmem:[%s1167_s24 + $0x40] sm:$0xff]  ;;  %v324_v56 = vld [vmem:[%s1167_s24 + $0x50] sm:$0xff] }
  0x4b   : > { %435 = vmatpush1.msra.mxu0 %v342_v35  ;;  %506 = vmatpush1.msra.mxu1 %v344_v36  ;;  %v319_v57 = vld [vmem:[%s1167_s24 + $0x28] sm:$0xff]  ;;  %v321_v58 = vld [vmem:[%s1167_s24 + $0x38] sm:$0xff]  ;;  %v318_v59 = vld [vmem:[%s1167_s24 + $0x20] sm:$0xff] }
  0x4c   : > { %436 = vmatprep.subr.mxu0 %v339_v37  ;;  %507 = vmatprep.subr.mxu1 %v341_v38  ;;  %v320_v60 = vld [vmem:[%s1167_s24 + $0x30] sm:$0xff]  ;;  %v315_v61 = vld [vmem:[%s1167_s24 + $0x8] sm:$0xff]  ;;  %v317_v62 = vld [vmem:[%s1167_s24 + $0x18] sm:$0xff] }
  0x4d   : > { %437 = vmatpush1.msra.mxu0 %v338_v39  ;;  %508 = vmatpush1.msra.mxu1 %v340_v40  ;;  %v314_v63 = vld [vmem:[%s1167_s24] sm:$0xff]  ;;  %v316_v0 = vld [vmem:[%s1167_s24 + $0x10] sm:$0xff]  ;;  %v379_v9 = vld [vmem:[%s1173_s10 + $0x8] sm:$0xff] }
  0x4e   : > { %438 = vmatprep.subr.mxu0 %v335_v41  ;;  %509 = vmatprep.subr.mxu1 %v337_v42  ;;  %v311_v1 = vld [vmem:[%s1275_s1] sm:$0xff]  ;;  %v575_v12 = vrot.slane %v379_v9, %v566_v4  ;;  %v393_v16 = vrot.slane %v379_v9, %v384_v5  ;;  %v579_v18 = vrot.slane %v379_v9, %v570_v7 }
  0x4f   : > { %439 = vmatpush1.msra.mxu0 %v334_v43  ;;  %510 = vmatpush1.msra.mxu1 %v336_v44  ;;  %v378_v6 = vld [vmem:[%s1173_s10] sm:$0xff]  ;;  %v619_v20 = vrot.slane %v379_v9, %v610_v10  ;;  %v397_v24 = vrot.slane %v379_v9, %v388_v11  ;;  %v623_v28 = vrot.slane %v379_v9, %v614_v15 }
  0x50   : > { %440 = vmatprep.subr.mxu0 %v331_v45  ;;  %511 = vmatprep.subr.mxu1 %v333_v46  ;;  %v310_v8 = vld [vmem:[%s1274_s0] sm:$0xff]  ;;  %v385_v13 = vrot.slane %v378_v6, %v384_v5  ;;  %v567_v14 = vrot.slane %v378_v6, %v566_v4  ;;  %v571_v17 = vrot.slane %v378_v6, %v570_v7  ;;  %v658_v45 = vsub.s32 7, %v383_v3 }
  0x51   : > { %441 = vmatpush1.msra.mxu0 %v330_v47  ;;  %512 = vmatpush1.msra.mxu1 %v332_v48  ;;  %v312_v19 = vsub.f32 %v310_v8, %v311_v1  ;;  %v611_v22 = vrot.slane %v378_v6, %v610_v10  ;;  %v389_v23 = vrot.slane %v378_v6, %v388_v11 }
  0x52   : > { %442 = vmatprep.subr.mxu0 %v327_v49  ;;  %513 = vmatprep.subr.mxu1 %v329_v50  ;;  %v595_v25 = vrot.slane %v575_v12, %v566_v4  ;;  %v405_v26 = vrot.slane %v385_v13, %v384_v5  ;;  %v587_v27 = vrot.slane %v567_v14, %v566_v4 }
  0x53   : > { %443 = vmatpush1.msra.mxu0 %v326_v51  ;;  %514 = vmatpush1.msra.mxu1 %v328_v52  ;;  %v615_v29 = vrot.slane %v378_v6, %v614_v15  ;;  %v413_v30 = vrot.slane %v393_v16, %v384_v5  ;;  %v591_v31 = vrot.slane %v571_v17, %v566_v4  ;;  %v313_v33 = vand.u32 2147483647, %v312_v19 }
  0x54   : > { %444 = vmatprep.subr.mxu0 %v323_v53  ;;  %515 = vmatprep.subr.mxu1 %v325_v54  ;;  %v599_v32 = vrot.slane %v579_v18, %v566_v4  ;;  %v639_v34 = vrot.slane %v619_v20, %v610_v10  ;;  %v663_v35 = vrot.slane %v379_v9, %v654_v21 }
  0x55   : > { %445 = vmatpush1.msra.mxu0 %v322_v55  ;;  %516 = vmatpush1.msra.mxu1 %v324_v56  ;;  %v631_v36 = vrot.slane %v611_v22, %v610_v10  ;;  %v655_v37 = vrot.slane %v378_v6, %v654_v21  ;;  %v409_v38 = vrot.slane %v389_v23, %v384_v5 }
  0x56   : > { %446 = vmatprep.subr.mxu0 %v319_v57  ;;  %517 = vmatprep.subr.mxu1 %v321_v58  ;;  %v417_v39 = vrot.slane %v397_v24, %v384_v5  ;;  %v602_v40 = vmul.f32 %v595_v25, %v311_v1  ;;  %v600_v43 = vmul.f32 %v587_v27, %v311_v1 }
  0x57   : > { %447 = vmatpush1.msra.mxu0 %v318_v59  ;;  %518 = vmatpush1.msra.mxu1 %v320_v60  ;;  %v643_v44 = vrot.slane %v623_v28, %v610_v10  ;;  %v635_v46 = vrot.slane %v615_v29, %v610_v10  ;;  %v601_v49 = vmul.f32 %v591_v31, %v311_v1 }
  0x58   : > { %448 = vmatprep.subr.mxu0 %v315_v61  ;;  %519 = vmatprep.subr.mxu1 %v317_v62  ;;  %v603_v50 = vmul.f32 %v599_v32, %v311_v1  ;;  %v646_v53 = vmul.f32 %v639_v34, %v313_v33  ;;  %v683_v54 = vrot.slane %v663_v35, %v654_v21 }
  0x59   : > { %449 = vmatpush1.msra.mxu0 %v314_v63  ;;  %520 = vmatpush1.msra.mxu1 %v316_v0  ;;  %v644_v55 = vmul.f32 %v631_v36, %v313_v33  ;;  %v675_v56 = vrot.slane %v655_v37, %v654_v21  ;;  %v647_v61 = vmul.f32 %v643_v44, %v313_v33 }
  0x5a   : > { %483 = vmatmul.mubr.f32.vlgmr.msra.gmra.mxu0 %v311_v1  ;;  %554 = vmatmul.mubr.f32.vlgmr.msra.gmra.mxu1 %v311_v1  ;;  %v667_v62 = vrot.slane %v379_v9, %v658_v45  ;;  %v645_v63 = vmul.f32 %v635_v46, %v313_v33  ;;  %v659_v0 = vrot.slane %v378_v6, %v658_v45 }
  0x5c   : > { %v687_v12 = vrot.slane %v667_v62, %v654_v21  ;;  %v679_v13 = vrot.slane %v659_v0, %v654_v21 }
 0x11a   : > { %v484_v41 = vpop.f32.mrf.mxu0  ;;  %v555_v42 = vpop.f32.mrf.mxu1 }
 0x11b   : > { %v485_v47 = vadd.f32 %v484_v41, %v405_v26  ;;  %v556_v48 = vadd.f32 %v555_v42, %v413_v30 }
 0x11c   : > { %v486_v51 = vpop.f32.mrf.mxu0  ;;  %v557_v52 = vpop.f32.mrf.mxu1 }
 0x11d   : > { %v560_v57 = vmul.f32 %v485_v47, %v310_v8  ;;  %v562_v58 = vmul.f32 %v556_v48, %v310_v8  ;;  %v487_v59 = vadd.f32 %v486_v51, %v409_v38  ;;  %v558_v60 = vadd.f32 %v557_v52, %v417_v39 }
 0x11f   : > { %v561_v2 = vmul.f32 %v487_v59, %v310_v8  ;;  %v563_v3 = vmul.f32 %v558_v60, %v310_v8  ;;  %v606_v4 = vadd.f32 %v602_v40, %v562_v58  ;;  %v604_v5 = vadd.f32 %v600_v43, %v560_v57 }
 0x121   : > { %v605_v7 = vadd.f32 %v601_v49, %v561_v2  ;;  %v607_v1 = vadd.f32 %v603_v50, %v563_v3  ;;  %v650_v10 = vadd.f32 %v646_v53, %v606_v4  ;;  %v648_v11 = vadd.f32 %v644_v55, %v604_v5 }
 0x123   : > { %v690_v14 = vadd.f32 %v683_v54, %v650_v10  ;;  %v688_v15 = vadd.f32 %v675_v56, %v648_v11  ;;  %v651_v16 = vadd.f32 %v647_v61, %v607_v1  ;;  %v649_v17 = vadd.f32 %v645_v63, %v605_v7 }
 0x125   : > { %696 = vadd.xlane.f32.xlu1 %v690_v14  ;;  %692 = vadd.xlane.f32.xlu0 %v688_v15  ;;  %v691_v9 = vadd.f32 %v687_v12, %v651_v16  ;;  %v689_v6 = vadd.f32 %v679_v13, %v649_v17 }
 0x129   : > { %698 = vadd.xlane.f32.xlu1 %v691_v9  ;;  %694 = vadd.xlane.f32.xlu0 %v689_v6 }
 0x1ae   : > { %v697_v8 = vpop.xlane.xlu1 %696  ;;  %v693_v18 = vpop.xlane.xlu0 %692 }
 0x1b2   : > { %v695_v19 = vpop.xlane.xlu0 %694  ;;  %v699_v21 = vpop.xlane.xlu1 %698 }
 0x1b3   : > { %v701_v20 = vsel %vm700_vm0, %v693_v18, %v695_v19 }
 0x1b4   : > { %v703_v22 = vsel %vm702_vm1, %v701_v20, %v697_v8 }
 0x1b5   : > { %v705_v23 = vsel %vm704_vm2, %v703_v22, %v699_v21 }
 0x1b6   : > { %v706_v24 = vmax.f32 %v705_v23, 0.0 }
 0x1b8   : > { %708 = vst.msk [vmem:[%s309_s14] sm:$0xff] %vm707_vm3, %v706_v24 }
 0x1b9 PF: > { %s20_s20 = sadd.s32 1, %s1039_s20   ;;  %s1283_s15 = smov %s1023_s16 }
 0x1ba   : > { %p17_p9 = scmp.ge.s32.totalorder %s20_s20, 6   ;;  %s1284_s16 = smov %s1027_s17 }
 0x1bb   : > { %s1285_s17 = smov %s1121_s27  ;;  %s1286_s18 = smov %s1035_s19 }
 0x1bc   : > { %s1287_s19 = smov %s1289_s22  ;;  %19 = sbr.rel (!%p17_p9) target bundleno = 6 (0x6), region = 95 }
 0x1c1   :  { %734 = vsyncpa [#allocation3], 1 }
 0x1c2   :  { %736 = vsyncpa [#allocation3 + $0x1], 1 }
 0x1c3   :  { %737 = vsyncpa [#allocation5], 1 }
 0x1c4   :  { %739 = vsyncpa [#allocation5 + $0x1], 1 }

</bundles_post_ra>
